<compile_context>
chip_gen: v7x
topology: tpu7x:2x2x1
jax: 0.10.0
libtpu: 0.0.40
codegen_flags: <defaults>
</compile_context>

<pallas_src>
import jax
import jax.numpy as jnp
from jax import lax
from jax.experimental import pallas as pl
from jax.experimental.pallas import tpu as pltpu


def _tv_kernel(x_ref, out_ref, acc_h_ref, acc_w_ref):
    i = pl.program_id(1)

    # Zero this partition's accumulators on its first step.
    @pl.when(i == 0)
    def _():
        acc_h_ref[...] = jnp.zeros_like(acc_h_ref)
        acc_w_ref[...] = jnp.zeros_like(acc_w_ref)

    n_planes = x_ref.shape[0]  # static (block shape)

    # Per-plane accumulation: live intermediates are one plane's (H-1, W) and
    # (H, W-1) f32 diffs, not block-sized f32 temporaries.
    def body(p, carry):
        xp = x_ref[p]                                        # (H, W), input dtype
        dh = (xp[1:, :] - xp[:-1, :]).astype(jnp.float32)    # (H-1, W)
        dw = (xp[:, 1:] - xp[:, :-1]).astype(jnp.float32)    # (H, W-1)
        acc_h_ref[...] += dh * dh                            # element-wise VPU adds
        acc_w_ref[...] += dw * dw
        return carry

    lax.fori_loop(0, n_planes, body, 0, unroll=min(n_planes, 8))

    # Single full reduce + single lane-dense output store per partition.
    @pl.when(i == pl.num_programs(1) - 1)
    def _():
        s_h = jnp.sum(acc_h_ref[...])
        s_w = jnp.sum(acc_w_ref[...])
        lane = lax.broadcasted_iota(jnp.int32, (8, 128), 1)
        out_ref[0] = jnp.where(lane == 0, s_h, jnp.where(lane == 1, s_w, 0.0))


def _device_defaults():
    """Per-generation defaults: partitions (TensorCores) and target block size."""
    kind = ""
    try:
        kind = jax.devices()[0].device_kind.lower()
    except Exception:
        pass
    if "v7" in kind:           # 2 TensorCores/chip, 3.2 TB/s HBM, 64 MiB VMEM
        return 2, 8 << 20
    return 1, 4 << 20          # v5e / v6e: single TensorCore


def _choose_tiling(n_planes, plane_bytes, num_partitions, target_block_bytes):
    """Pick (G, P, S) with G * S * P == n_planes exactly (no padding copy)."""
    g = max(1, min(num_partitions, n_planes))
    while n_planes % g != 0:   # fall back to a divisor of the plane count
        g -= 1
    m = n_planes // g
    max_p = max(1, target_block_bytes // plane_bytes)
    p = 1
    for d in range(1, m + 1):  # trace-time only; m = B*C is small
        if m % d == 0 and d <= max_p:
            p = d
    return g, p, m // p


def tv_loss(x, tv_loss_weight=1.0, *, num_partitions=None, target_block_bytes=None):
    """Total-variation loss; semantics identical to the PyTorch TVLoss module."""
    B, C, H, W = x.shape
    if H < 2 or W < 2:
        # PyTorch's TVLoss divides by zero here; refuse instead of emulating it.
        raise ValueError("TVLoss requires H >= 2 and W >= 2.")

    default_g, default_blk = _device_defaults()
    if num_partitions is None:
        num_partitions = default_g
    if target_block_bytes is None:
        target_block_bytes = default_blk

    N = B * C
    xr = x.reshape(N, H, W)                       # contiguous reshape: no HBM copy
    plane_bytes = H * W * x.dtype.itemsize
    G, P, S = _choose_tiling(N, plane_bytes, num_partitions, target_block_bytes)

    # VMEM budget: double-buffered input block + both f32 accumulators + headroom.
    block_bytes = P * plane_bytes
    vmem_limit = int(min(max(2 * block_bytes + 2 * H * W * 4 + (4 << 20), 32 << 20),
                         128 << 20))

    out = pl.pallas_call(
        _tv_kernel,
        out_shape=jax.ShapeDtypeStruct((G, 8, 128), jnp.float32),
        grid_spec=pltpu.PrefetchScalarGridSpec(
            num_scalar_prefetch=0,
            grid=(G, S),
            in_specs=[
                pl.BlockSpec((P, H, W), lambda g, i, S=S: (g * S + i, 0, 0)),
            ],
            out_specs=pl.BlockSpec((1, 8, 128), lambda g, i: (g, 0, 0)),
            scratch_shapes=[
                pltpu.VMEM((H - 1, W), jnp.float32),   # height-diff accumulator
                pltpu.VMEM((H, W - 1), jnp.float32),   # width-diff accumulator
            ],
        ),
        compiler_params=pltpu.CompilerParams(
            dimension_semantics=("parallel", "arbitrary"),
            vmem_limit_bytes=vmem_limit,
        ),
    )(xr)

    h_tv = jnp.sum(out[:, 0, 0])
    w_tv = jnp.sum(out[:, 0, 1])

    # Scalar glue (counts / weight / batch division), as in the PyTorch module.
    count_h = C * (H - 1) * W
    count_w = C * H * (W - 1)
    return tv_loss_weight * 2.0 * (h_tv / count_h + w_tv / count_w) / B


def _tv_ref(x, tv_loss_weight):
    B, C, H, W = x.shape
    h_tv = jnp.sum((x[:, :, 1:, :] - x[:, :, :-1, :]) ** 2)
    w_tv = jnp.sum((x[:, :, :, 1:] - x[:, :, :, :-1]) ** 2)
    return tv_loss_weight * 2.0 * (h_tv / (C * (H - 1) * W)
                                   + w_tv / (C * H * (W - 1))) / B


if __name__ == "__main__":
    k1, k2 = jax.random.split(jax.random.PRNGKey(0))

    # Case 1: module-sized input (batch=2, channels=4, spatial 16x16).
    x1 = jax.random.normal(k1, (2, 4, 16, 16), dtype=jnp.float32)
    loss1 = tv_loss(x1, tv_loss_weight=1.0)
    jax.block_until_ready(loss1)
    ref1 = _tv_ref(x1, 1.0)
    assert jnp.allclose(loss1, ref1, rtol=1e-5, atol=1e-6), (loss1, ref1)

    # Case 2: forces G=2 partitions and multi-step accumulation (S=3, P=1)
    # with no padding (B*C = 6; small block target).
    x2 = jax.random.normal(k2, (2, 3, 64, 128), dtype=jnp.float32)
    loss2 = tv_loss(x2, tv_loss_weight=0.5,
                    num_partitions=2, target_block_bytes=64 * 1024)
    jax.block_until_ready(loss2)
    ref2 = _tv_ref(x2, 0.5)
    assert jnp.allclose(loss2, ref2, rtol=1e-4, atol=1e-6), (loss2, ref2)

    print("KERNEL_OK")
</pallas_src>

<mosaic_0001>
module attributes {stable_mosaic.version = 11 : i64} {
  func.func @_tv_kernel(%arg0: i32, %arg1: i32, %arg2: memref<8x16x16xf32, #tpu.memory_space<vmem>>, %arg3: memref<1x8x128xf32, #tpu.memory_space<vmem>>, %arg4: memref<15x16xf32, #tpu.memory_space<vmem>>, %arg5: memref<16x15xf32, #tpu.memory_space<vmem>>) attributes {dimension_semantics = [#tpu.dimension_semantics<parallel>, #tpu.dimension_semantics<arbitrary>], iteration_bounds = array<i64: 1, 1>, scalar_prefetch = 0 : i64, scratch_operands = 2 : i64, tpu.core_type = #tpu.core_type<tc>, window_params = [{transform_indices = @transform_0, window_bounds = array<i64: 8, 16, 16>}, {transform_indices = @transform_1, window_bounds = array<i64: 1, 8, 128>}]} {
    %c0_i32 = arith.constant 0 : i32
    %0 = arith.cmpi eq, %arg1, %c0_i32 : i32
    %1 = arith.extui %0 : i1 to i32
    %c0_i32_0 = arith.constant 0 : i32
    %2 = arith.cmpi ne, %1, %c0_i32_0 : i32
    scf.if %2 {
      %cst = arith.constant 0.000000e+00 : f32
      %142 = vector.broadcast %cst : f32 to vector<15x16xf32>
      %c0_83 = arith.constant 0 : index
      %c0_84 = arith.constant 0 : index
      %143 = vector.load %arg4[%c0_83, %c0_84] : memref<15x16xf32, #tpu.memory_space<vmem>>, vector<15x16xf32>
      tpu.vector_store %arg4[%c0_83, %c0_84], %142 {strides = array<i32>} : memref<15x16xf32, #tpu.memory_space<vmem>>, vector<15x16xf32>,
      %cst_85 = arith.constant 0.000000e+00 : f32
      %144 = vector.broadcast %cst_85 : f32 to vector<16x15xf32>
      %c0_86 = arith.constant 0 : index
      %c0_87 = arith.constant 0 : index
      %145 = vector.load %arg5[%c0_86, %c0_87] : memref<16x15xf32, #tpu.memory_space<vmem>>, vector<16x15xf32>
      tpu.vector_store %arg5[%c0_86, %c0_87], %144 {strides = array<i32>} : memref<16x15xf32, #tpu.memory_space<vmem>>, vector<16x15xf32>,
    } else {
    }
    %c0_i32_1 = arith.constant 0 : i32
    %3 = arith.index_cast %c0_i32_1 : i32 to index
    %c0 = arith.constant 0 : index
    %c0_2 = arith.constant 0 : index
    %4 = vector.load %arg2[%3, %c0, %c0_2] : memref<8x16x16xf32, #tpu.memory_space<vmem>>, vector<1x16x16xf32>
    %5 = vector.shape_cast %4 : vector<1x16x16xf32> to vector<16x16xf32>
    %6 = vector.extract_strided_slice %5 {offsets = [1, 0], sizes = [15, 16], strides = [1, 1]} : vector<16x16xf32> to vector<15x16xf32>
    %7 = vector.extract_strided_slice %5 {offsets = [0, 0], sizes = [15, 16], strides = [1, 1]} : vector<16x16xf32> to vector<15x16xf32>
    %8 = arith.subf %6, %7 : vector<15x16xf32>
    %9 = vector.extract_strided_slice %5 {offsets = [0, 1], sizes = [16, 15], strides = [1, 1]} : vector<16x16xf32> to vector<16x15xf32>
    %10 = vector.extract_strided_slice %5 {offsets = [0, 0], sizes = [16, 15], strides = [1, 1]} : vector<16x16xf32> to vector<16x15xf32>
    %11 = arith.subf %9, %10 : vector<16x15xf32>
    %c0_3 = arith.constant 0 : index
    %c0_4 = arith.constant 0 : index
    %12 = vector.load %arg4[%c0_3, %c0_4] : memref<15x16xf32, #tpu.memory_space<vmem>>, vector<15x16xf32>
    %13 = arith.mulf %8, %8 : vector<15x16xf32>
    %14 = arith.addf %12, %13 : vector<15x16xf32>
    %c0_5 = arith.constant 0 : index
    %c0_6 = arith.constant 0 : index
    %15 = vector.load %arg4[%c0_5, %c0_6] : memref<15x16xf32, #tpu.memory_space<vmem>>, vector<15x16xf32>
    tpu.vector_store %arg4[%c0_5, %c0_6], %14 {strides = array<i32>} : memref<15x16xf32, #tpu.memory_space<vmem>>, vector<15x16xf32>,
    %c0_7 = arith.constant 0 : index
    %c0_8 = arith.constant 0 : index
    %16 = vector.load %arg5[%c0_7, %c0_8] : memref<16x15xf32, #tpu.memory_space<vmem>>, vector<16x15xf32>
    %17 = arith.mulf %11, %11 : vector<16x15xf32>
    %18 = arith.addf %16, %17 : vector<16x15xf32>
    %c0_9 = arith.constant 0 : index
    %c0_10 = arith.constant 0 : index
    %19 = vector.load %arg5[%c0_9, %c0_10] : memref<16x15xf32, #tpu.memory_space<vmem>>, vector<16x15xf32>
    tpu.vector_store %arg5[%c0_9, %c0_10], %18 {strides = array<i32>} : memref<16x15xf32, #tpu.memory_space<vmem>>, vector<16x15xf32>,
    %c1_i32 = arith.constant 1 : i32
    %20 = arith.index_cast %c1_i32 : i32 to index
    %c0_11 = arith.constant 0 : index
    %c0_12 = arith.constant 0 : index
    %21 = vector.load %arg2[%20, %c0_11, %c0_12] : memref<8x16x16xf32, #tpu.memory_space<vmem>>, vector<1x16x16xf32>
    %22 = vector.shape_cast %21 : vector<1x16x16xf32> to vector<16x16xf32>
    %23 = vector.extract_strided_slice %22 {offsets = [1, 0], sizes = [15, 16], strides = [1, 1]} : vector<16x16xf32> to vector<15x16xf32>
    %24 = vector.extract_strided_slice %22 {offsets = [0, 0], sizes = [15, 16], strides = [1, 1]} : vector<16x16xf32> to vector<15x16xf32>
    %25 = arith.subf %23, %24 : vector<15x16xf32>
    %26 = vector.extract_strided_slice %22 {offsets = [0, 1], sizes = [16, 15], strides = [1, 1]} : vector<16x16xf32> to vector<16x15xf32>
    %27 = vector.extract_strided_slice %22 {offsets = [0, 0], sizes = [16, 15], strides = [1, 1]} : vector<16x16xf32> to vector<16x15xf32>
    %28 = arith.subf %26, %27 : vector<16x15xf32>
    %c0_13 = arith.constant 0 : index
    %c0_14 = arith.constant 0 : index
    %29 = vector.load %arg4[%c0_13, %c0_14] : memref<15x16xf32, #tpu.memory_space<vmem>>, vector<15x16xf32>
    %30 = arith.mulf %25, %25 : vector<15x16xf32>
    %31 = arith.addf %29, %30 : vector<15x16xf32>
    %c0_15 = arith.constant 0 : index
    %c0_16 = arith.constant 0 : index
    %32 = vector.load %arg4[%c0_15, %c0_16] : memref<15x16xf32, #tpu.memory_space<vmem>>, vector<15x16xf32>
    tpu.vector_store %arg4[%c0_15, %c0_16], %31 {strides = array<i32>} : memref<15x16xf32, #tpu.memory_space<vmem>>, vector<15x16xf32>,
    %c0_17 = arith.constant 0 : index
    %c0_18 = arith.constant 0 : index
    %33 = vector.load %arg5[%c0_17, %c0_18] : memref<16x15xf32, #tpu.memory_space<vmem>>, vector<16x15xf32>
    %34 = arith.mulf %28, %28 : vector<16x15xf32>
    %35 = arith.addf %33, %34 : vector<16x15xf32>
    %c0_19 = arith.constant 0 : index
    %c0_20 = arith.constant 0 : index
    %36 = vector.load %arg5[%c0_19, %c0_20] : memref<16x15xf32, #tpu.memory_space<vmem>>, vector<16x15xf32>
    tpu.vector_store %arg5[%c0_19, %c0_20], %35 {strides = array<i32>} : memref<16x15xf32, #tpu.memory_space<vmem>>, vector<16x15xf32>,
    %c2_i32 = arith.constant 2 : i32
    %37 = arith.index_cast %c2_i32 : i32 to index
    %c0_21 = arith.constant 0 : index
    %c0_22 = arith.constant 0 : index
    %38 = vector.load %arg2[%37, %c0_21, %c0_22] : memref<8x16x16xf32, #tpu.memory_space<vmem>>, vector<1x16x16xf32>
    %39 = vector.shape_cast %38 : vector<1x16x16xf32> to vector<16x16xf32>
    %40 = vector.extract_strided_slice %39 {offsets = [1, 0], sizes = [15, 16], strides = [1, 1]} : vector<16x16xf32> to vector<15x16xf32>
    %41 = vector.extract_strided_slice %39 {offsets = [0, 0], sizes = [15, 16], strides = [1, 1]} : vector<16x16xf32> to vector<15x16xf32>
    %42 = arith.subf %40, %41 : vector<15x16xf32>
    %43 = vector.extract_strided_slice %39 {offsets = [0, 1], sizes = [16, 15], strides = [1, 1]} : vector<16x16xf32> to vector<16x15xf32>
    %44 = vector.extract_strided_slice %39 {offsets = [0, 0], sizes = [16, 15], strides = [1, 1]} : vector<16x16xf32> to vector<16x15xf32>
    %45 = arith.subf %43, %44 : vector<16x15xf32>
    %c0_23 = arith.constant 0 : index
    %c0_24 = arith.constant 0 : index
    %46 = vector.load %arg4[%c0_23, %c0_24] : memref<15x16xf32, #tpu.memory_space<vmem>>, vector<15x16xf32>
    %47 = arith.mulf %42, %42 : vector<15x16xf32>
    %48 = arith.addf %46, %47 : vector<15x16xf32>
    %c0_25 = arith.constant 0 : index
    %c0_26 = arith.constant 0 : index
    %49 = vector.load %arg4[%c0_25, %c0_26] : memref<15x16xf32, #tpu.memory_space<vmem>>, vector<15x16xf32>
    tpu.vector_store %arg4[%c0_25, %c0_26], %48 {strides = array<i32>} : memref<15x16xf32, #tpu.memory_space<vmem>>, vector<15x16xf32>,
    %c0_27 = arith.constant 0 : index
    %c0_28 = arith.constant 0 : index
    %50 = vector.load %arg5[%c0_27, %c0_28] : memref<16x15xf32, #tpu.memory_space<vmem>>, vector<16x15xf32>
    %51 = arith.mulf %45, %45 : vector<16x15xf32>
    %52 = arith.addf %50, %51 : vector<16x15xf32>
    %c0_29 = arith.constant 0 : index
    %c0_30 = arith.constant 0 : index
    %53 = vector.load %arg5[%c0_29, %c0_30] : memref<16x15xf32, #tpu.memory_space<vmem>>, vector<16x15xf32>
    tpu.vector_store %arg5[%c0_29, %c0_30], %52 {strides = array<i32>} : memref<16x15xf32, #tpu.memory_space<vmem>>, vector<16x15xf32>,
    %c3_i32 = arith.constant 3 : i32
    %54 = arith.index_cast %c3_i32 : i32 to index
    %c0_31 = arith.constant 0 : index
    %c0_32 = arith.constant 0 : index
    %55 = vector.load %arg2[%54, %c0_31, %c0_32] : memref<8x16x16xf32, #tpu.memory_space<vmem>>, vector<1x16x16xf32>
    %56 = vector.shape_cast %55 : vector<1x16x16xf32> to vector<16x16xf32>
    %57 = vector.extract_strided_slice %56 {offsets = [1, 0], sizes = [15, 16], strides = [1, 1]} : vector<16x16xf32> to vector<15x16xf32>
    %58 = vector.extract_strided_slice %56 {offsets = [0, 0], sizes = [15, 16], strides = [1, 1]} : vector<16x16xf32> to vector<15x16xf32>
    %59 = arith.subf %57, %58 : vector<15x16xf32>
    %60 = vector.extract_strided_slice %56 {offsets = [0, 1], sizes = [16, 15], strides = [1, 1]} : vector<16x16xf32> to vector<16x15xf32>
    %61 = vector.extract_strided_slice %56 {offsets = [0, 0], sizes = [16, 15], strides = [1, 1]} : vector<16x16xf32> to vector<16x15xf32>
    %62 = arith.subf %60, %61 : vector<16x15xf32>
    %c0_33 = arith.constant 0 : index
    %c0_34 = arith.constant 0 : index
    %63 = vector.load %arg4[%c0_33, %c0_34] : memref<15x16xf32, #tpu.memory_space<vmem>>, vector<15x16xf32>
    %64 = arith.mulf %59, %59 : vector<15x16xf32>
    %65 = arith.addf %63, %64 : vector<15x16xf32>
    %c0_35 = arith.constant 0 : index
    %c0_36 = arith.constant 0 : index
    %66 = vector.load %arg4[%c0_35, %c0_36] : memref<15x16xf32, #tpu.memory_space<vmem>>, vector<15x16xf32>
    tpu.vector_store %arg4[%c0_35, %c0_36], %65 {strides = array<i32>} : memref<15x16xf32, #tpu.memory_space<vmem>>, vector<15x16xf32>,
    %c0_37 = arith.constant 0 : index
    %c0_38 = arith.constant 0 : index
    %67 = vector.load %arg5[%c0_37, %c0_38] : memref<16x15xf32, #tpu.memory_space<vmem>>, vector<16x15xf32>
    %68 = arith.mulf %62, %62 : vector<16x15xf32>
    %69 = arith.addf %67, %68 : vector<16x15xf32>
    %c0_39 = arith.constant 0 : index
    %c0_40 = arith.constant 0 : index
    %70 = vector.load %arg5[%c0_39, %c0_40] : memref<16x15xf32, #tpu.memory_space<vmem>>, vector<16x15xf32>
    tpu.vector_store %arg5[%c0_39, %c0_40], %69 {strides = array<i32>} : memref<16x15xf32, #tpu.memory_space<vmem>>, vector<16x15xf32>,
    %c4_i32 = arith.constant 4 : i32
    %71 = arith.index_cast %c4_i32 : i32 to index
    %c0_41 = arith.constant 0 : index
    %c0_42 = arith.constant 0 : index
    %72 = vector.load %arg2[%71, %c0_41, %c0_42] : memref<8x16x16xf32, #tpu.memory_space<vmem>>, vector<1x16x16xf32>
    %73 = vector.shape_cast %72 : vector<1x16x16xf32> to vector<16x16xf32>
    %74 = vector.extract_strided_slice %73 {offsets = [1, 0], sizes = [15, 16], strides = [1, 1]} : vector<16x16xf32> to vector<15x16xf32>
    %75 = vector.extract_strided_slice %73 {offsets = [0, 0], sizes = [15, 16], strides = [1, 1]} : vector<16x16xf32> to vector<15x16xf32>
    %76 = arith.subf %74, %75 : vector<15x16xf32>
    %77 = vector.extract_strided_slice %73 {offsets = [0, 1], sizes = [16, 15], strides = [1, 1]} : vector<16x16xf32> to vector<16x15xf32>
    %78 = vector.extract_strided_slice %73 {offsets = [0, 0], sizes = [16, 15], strides = [1, 1]} : vector<16x16xf32> to vector<16x15xf32>
    %79 = arith.subf %77, %78 : vector<16x15xf32>
    %c0_43 = arith.constant 0 : index
    %c0_44 = arith.constant 0 : index
    %80 = vector.load %arg4[%c0_43, %c0_44] : memref<15x16xf32, #tpu.memory_space<vmem>>, vector<15x16xf32>
    %81 = arith.mulf %76, %76 : vector<15x16xf32>
    %82 = arith.addf %80, %81 : vector<15x16xf32>
    %c0_45 = arith.constant 0 : index
    %c0_46 = arith.constant 0 : index
    %83 = vector.load %arg4[%c0_45, %c0_46] : memref<15x16xf32, #tpu.memory_space<vmem>>, vector<15x16xf32>
    tpu.vector_store %arg4[%c0_45, %c0_46], %82 {strides = array<i32>} : memref<15x16xf32, #tpu.memory_space<vmem>>, vector<15x16xf32>,
    %c0_47 = arith.constant 0 : index
    %c0_48 = arith.constant 0 : index
    %84 = vector.load %arg5[%c0_47, %c0_48] : memref<16x15xf32, #tpu.memory_space<vmem>>, vector<16x15xf32>
    %85 = arith.mulf %79, %79 : vector<16x15xf32>
    %86 = arith.addf %84, %85 : vector<16x15xf32>
    %c0_49 = arith.constant 0 : index
    %c0_50 = arith.constant 0 : index
    %87 = vector.load %arg5[%c0_49, %c0_50] : memref<16x15xf32, #tpu.memory_space<vmem>>, vector<16x15xf32>
    tpu.vector_store %arg5[%c0_49, %c0_50], %86 {strides = array<i32>} : memref<16x15xf32, #tpu.memory_space<vmem>>, vector<16x15xf32>,
    %c5_i32 = arith.constant 5 : i32
    %88 = arith.index_cast %c5_i32 : i32 to index
    %c0_51 = arith.constant 0 : index
    %c0_52 = arith.constant 0 : index
    %89 = vector.load %arg2[%88, %c0_51, %c0_52] : memref<8x16x16xf32, #tpu.memory_space<vmem>>, vector<1x16x16xf32>
    %90 = vector.shape_cast %89 : vector<1x16x16xf32> to vector<16x16xf32>
    %91 = vector.extract_strided_slice %90 {offsets = [1, 0], sizes = [15, 16], strides = [1, 1]} : vector<16x16xf32> to vector<15x16xf32>
    %92 = vector.extract_strided_slice %90 {offsets = [0, 0], sizes = [15, 16], strides = [1, 1]} : vector<16x16xf32> to vector<15x16xf32>
    %93 = arith.subf %91, %92 : vector<15x16xf32>
    %94 = vector.extract_strided_slice %90 {offsets = [0, 1], sizes = [16, 15], strides = [1, 1]} : vector<16x16xf32> to vector<16x15xf32>
    %95 = vector.extract_strided_slice %90 {offsets = [0, 0], sizes = [16, 15], strides = [1, 1]} : vector<16x16xf32> to vector<16x15xf32>
    %96 = arith.subf %94, %95 : vector<16x15xf32>
    %c0_53 = arith.constant 0 : index
    %c0_54 = arith.constant 0 : index
    %97 = vector.load %arg4[%c0_53, %c0_54] : memref<15x16xf32, #tpu.memory_space<vmem>>, vector<15x16xf32>
    %98 = arith.mulf %93, %93 : vector<15x16xf32>
    %99 = arith.addf %97, %98 : vector<15x16xf32>
    %c0_55 = arith.constant 0 : index
    %c0_56 = arith.constant 0 : index
    %100 = vector.load %arg4[%c0_55, %c0_56] : memref<15x16xf32, #tpu.memory_space<vmem>>, vector<15x16xf32>
    tpu.vector_store %arg4[%c0_55, %c0_56], %99 {strides = array<i32>} : memref<15x16xf32, #tpu.memory_space<vmem>>, vector<15x16xf32>,
    %c0_57 = arith.constant 0 : index
    %c0_58 = arith.constant 0 : index
    %101 = vector.load %arg5[%c0_57, %c0_58] : memref<16x15xf32, #tpu.memory_space<vmem>>, vector<16x15xf32>
    %102 = arith.mulf %96, %96 : vector<16x15xf32>
    %103 = arith.addf %101, %102 : vector<16x15xf32>
    %c0_59 = arith.constant 0 : index
    %c0_60 = arith.constant 0 : index
    %104 = vector.load %arg5[%c0_59, %c0_60] : memref<16x15xf32, #tpu.memory_space<vmem>>, vector<16x15xf32>
    tpu.vector_store %arg5[%c0_59, %c0_60], %103 {strides = array<i32>} : memref<16x15xf32, #tpu.memory_space<vmem>>, vector<16x15xf32>,
    %c6_i32 = arith.constant 6 : i32
    %105 = arith.index_cast %c6_i32 : i32 to index
    %c0_61 = arith.constant 0 : index
    %c0_62 = arith.constant 0 : index
    %106 = vector.load %arg2[%105, %c0_61, %c0_62] : memref<8x16x16xf32, #tpu.memory_space<vmem>>, vector<1x16x16xf32>
    %107 = vector.shape_cast %106 : vector<1x16x16xf32> to vector<16x16xf32>
    %108 = vector.extract_strided_slice %107 {offsets = [1, 0], sizes = [15, 16], strides = [1, 1]} : vector<16x16xf32> to vector<15x16xf32>
    %109 = vector.extract_strided_slice %107 {offsets = [0, 0], sizes = [15, 16], strides = [1, 1]} : vector<16x16xf32> to vector<15x16xf32>
    %110 = arith.subf %108, %109 : vector<15x16xf32>
    %111 = vector.extract_strided_slice %107 {offsets = [0, 1], sizes = [16, 15], strides = [1, 1]} : vector<16x16xf32> to vector<16x15xf32>
    %112 = vector.extract_strided_slice %107 {offsets = [0, 0], sizes = [16, 15], strides = [1, 1]} : vector<16x16xf32> to vector<16x15xf32>
    %113 = arith.subf %111, %112 : vector<16x15xf32>
    %c0_63 = arith.constant 0 : index
    %c0_64 = arith.constant 0 : index
    %114 = vector.load %arg4[%c0_63, %c0_64] : memref<15x16xf32, #tpu.memory_space<vmem>>, vector<15x16xf32>
    %115 = arith.mulf %110, %110 : vector<15x16xf32>
    %116 = arith.addf %114, %115 : vector<15x16xf32>
    %c0_65 = arith.constant 0 : index
    %c0_66 = arith.constant 0 : index
    %117 = vector.load %arg4[%c0_65, %c0_66] : memref<15x16xf32, #tpu.memory_space<vmem>>, vector<15x16xf32>
    tpu.vector_store %arg4[%c0_65, %c0_66], %116 {strides = array<i32>} : memref<15x16xf32, #tpu.memory_space<vmem>>, vector<15x16xf32>,
    %c0_67 = arith.constant 0 : index
    %c0_68 = arith.constant 0 : index
    %118 = vector.load %arg5[%c0_67, %c0_68] : memref<16x15xf32, #tpu.memory_space<vmem>>, vector<16x15xf32>
    %119 = arith.mulf %113, %113 : vector<16x15xf32>
    %120 = arith.addf %118, %119 : vector<16x15xf32>
    %c0_69 = arith.constant 0 : index
    %c0_70 = arith.constant 0 : index
    %121 = vector.load %arg5[%c0_69, %c0_70] : memref<16x15xf32, #tpu.memory_space<vmem>>, vector<16x15xf32>
    tpu.vector_store %arg5[%c0_69, %c0_70], %120 {strides = array<i32>} : memref<16x15xf32, #tpu.memory_space<vmem>>, vector<16x15xf32>,
    %c7_i32 = arith.constant 7 : i32
    %122 = arith.index_cast %c7_i32 : i32 to index
    %c0_71 = arith.constant 0 : index
    %c0_72 = arith.constant 0 : index
    %123 = vector.load %arg2[%122, %c0_71, %c0_72] : memref<8x16x16xf32, #tpu.memory_space<vmem>>, vector<1x16x16xf32>
    %124 = vector.shape_cast %123 : vector<1x16x16xf32> to vector<16x16xf32>
    %125 = vector.extract_strided_slice %124 {offsets = [1, 0], sizes = [15, 16], strides = [1, 1]} : vector<16x16xf32> to vector<15x16xf32>
    %126 = vector.extract_strided_slice %124 {offsets = [0, 0], sizes = [15, 16], strides = [1, 1]} : vector<16x16xf32> to vector<15x16xf32>
    %127 = arith.subf %125, %126 : vector<15x16xf32>
    %128 = vector.extract_strided_slice %124 {offsets = [0, 1], sizes = [16, 15], strides = [1, 1]} : vector<16x16xf32> to vector<16x15xf32>
    %129 = vector.extract_strided_slice %124 {offsets = [0, 0], sizes = [16, 15], strides = [1, 1]} : vector<16x16xf32> to vector<16x15xf32>
    %130 = arith.subf %128, %129 : vector<16x15xf32>
    %c0_73 = arith.constant 0 : index
    %c0_74 = arith.constant 0 : index
    %131 = vector.load %arg4[%c0_73, %c0_74] : memref<15x16xf32, #tpu.memory_space<vmem>>, vector<15x16xf32>
    %132 = arith.mulf %127, %127 : vector<15x16xf32>
    %133 = arith.addf %131, %132 : vector<15x16xf32>
    %c0_75 = arith.constant 0 : index
    %c0_76 = arith.constant 0 : index
    %134 = vector.load %arg4[%c0_75, %c0_76] : memref<15x16xf32, #tpu.memory_space<vmem>>, vector<15x16xf32>
    tpu.vector_store %arg4[%c0_75, %c0_76], %133 {strides = array<i32>} : memref<15x16xf32, #tpu.memory_space<vmem>>, vector<15x16xf32>,
    %c0_77 = arith.constant 0 : index
    %c0_78 = arith.constant 0 : index
    %135 = vector.load %arg5[%c0_77, %c0_78] : memref<16x15xf32, #tpu.memory_space<vmem>>, vector<16x15xf32>
    %136 = arith.mulf %130, %130 : vector<16x15xf32>
    %137 = arith.addf %135, %136 : vector<16x15xf32>
    %c0_79 = arith.constant 0 : index
    %c0_80 = arith.constant 0 : index
    %138 = vector.load %arg5[%c0_79, %c0_80] : memref<16x15xf32, #tpu.memory_space<vmem>>, vector<16x15xf32>
    tpu.vector_store %arg5[%c0_79, %c0_80], %137 {strides = array<i32>} : memref<16x15xf32, #tpu.memory_space<vmem>>, vector<16x15xf32>,
    %c8_i32 = arith.constant 8 : i32
    %c0_i32_81 = arith.constant 0 : i32
    %139 = arith.cmpi eq, %arg1, %c0_i32_81 : i32
    %140 = arith.extui %139 : i1 to i32
    %c0_i32_82 = arith.constant 0 : i32
    %141 = arith.cmpi ne, %140, %c0_i32_82 : i32
    scf.if %141 {
      %c0_83 = arith.constant 0 : index
      %c0_84 = arith.constant 0 : index
      %142 = vector.load %arg4[%c0_83, %c0_84] : memref<15x16xf32, #tpu.memory_space<vmem>>, vector<15x16xf32>
      %143 = vector.shape_cast %142 : vector<15x16xf32> to vector<1x15x16xf32>
      %cst = arith.constant dense<0.000000e+00> : vector<1xf32>
      %144 = vector.multi_reduction <add>, %143, %cst [1, 2] : vector<1x15x16xf32> to vector<1xf32>
      %145 = vector.shape_cast %144 : vector<1xf32> to vector<1x1x1xf32>
      %146 = vector.extract %145[0, 0, 0] : f32 from vector<1x1x1xf32>
      %c0_85 = arith.constant 0 : index
      %c0_86 = arith.constant 0 : index
      %147 = vector.load %arg5[%c0_85, %c0_86] : memref<16x15xf32, #tpu.memory_space<vmem>>, vector<16x15xf32>
      %148 = vector.shape_cast %147 : vector<16x15xf32> to vector<1x16x15xf32>
      %cst_87 = arith.constant dense<0.000000e+00> : vector<1xf32>
      %149 = vector.multi_reduction <add>, %148, %cst_87 [1, 2] : vector<1x16x15xf32> to vector<1xf32>
      %150 = vector.shape_cast %149 : vector<1xf32> to vector<1x1x1xf32>
      %151 = vector.extract %150[0, 0, 0] : f32 from vector<1x1x1xf32>
      %152 = tpu.iota {dimensions = array<i32: 1>} : vector<8x128xi32>
      %c0_i32_88 = arith.constant 0 : i32
      %153 = vector.broadcast %c0_i32_88 : i32 to vector<8x128xi32>
      %154 = arith.cmpi eq, %152, %153 : vector<8x128xi32>
      %c1_i32_89 = arith.constant 1 : i32
      %155 = vector.broadcast %c1_i32_89 : i32 to vector<8x128xi32>
      %156 = arith.cmpi eq, %152, %155 : vector<8x128xi32>
      %cst_90 = arith.constant 0.000000e+00 : f32
      %157 = vector.broadcast %151 : f32 to vector<8x128xf32>
      %158 = vector.broadcast %cst_90 : f32 to vector<8x128xf32>
      %159 = arith.select %156, %157, %158 : vector<8x128xi1>, vector<8x128xf32>
      %160 = vector.broadcast %146 : f32 to vector<8x128xf32>
      %161 = arith.select %154, %160, %159 : vector<8x128xi1>, vector<8x128xf32>
      %c0_91 = arith.constant 0 : index
      %c0_92 = arith.constant 0 : index
      %c0_93 = arith.constant 0 : index
      %162 = vector.load %arg3[%c0_91, %c0_92, %c0_93] : memref<1x8x128xf32, #tpu.memory_space<vmem>>, vector<1x8x128xf32>
      %163 = vector.shape_cast %162 : vector<1x8x128xf32> to vector<8x128xf32>
      %164 = vector.shape_cast %161 : vector<8x128xf32> to vector<1x8x128xf32>
      tpu.vector_store %arg3[%c0_91, %c0_92, %c0_93], %164 {strides = array<i32>} : memref<1x8x128xf32, #tpu.memory_space<vmem>>, vector<1x8x128xf32>,
    } else {
    }
    return
  }
  func.func @transform_0(%arg0: i32, %arg1: i32) -> (i32, i32, i32) {
    %c1_i32 = arith.constant 1 : i32
    %0 = arith.muli %arg0, %c1_i32 : i32
    %1 = arith.addi %0, %arg1 : i32
    %c0_i32 = arith.constant 0 : i32
    %c0_i32_0 = arith.constant 0 : i32
    %c0_i32_1 = arith.constant 0 : i32
    return %1, %c0_i32, %c0_i32_0 : i32, i32, i32
  }
  func.func @transform_1(%arg0: i32, %arg1: i32) -> (i32, i32, i32) {
    %c0_i32 = arith.constant 0 : i32
    %c0_i32_0 = arith.constant 0 : i32
    %c0_i32_1 = arith.constant 0 : i32
    return %arg0, %c0_i32, %c0_i32_0 : i32, i32, i32
  }
}

</mosaic_0001>

<bundles_post_ra>
// kernel: tpu_custom_call.1
= control target key start
LH: loop header
LB: loop body
LE: loop exit
PB: predicated region body
PF: predicated region fallthrough
CT: control target
= control target key end

     0   :  { %6 = vsyncpa [#allocation5], 0  ;;  %s806_s0 = inlined_call_operand.hbm [shape: f32[8,16,16], index: 0, kind: input, shape index: {}]   ;;  %s807_s1 = inlined_call_operand.hbm [shape: f32[1,8,128], index: 1, kind: output, shape index: {}]  }
   0x1   :  { %7 = vsyncpa [#allocation6], 0  ;;  %s567_s6 = smov [#allocation4]   ;;  %s519_s10 = scalar_lea.hbm %s806_s0, 2048 }
   0x2   :  { %s18_s7 = sshll.u32 %s567_s6, 4  ;;  %p520_p0 = scmp.ne.s32.totalorder %s806_s0, %s519_s10  ;;  %s19_s7 = int_to_ptr.vmem [resolvable:$true] %s18_s7 }
   0x3   :  { %p523_p1 = scmp.lt.u32.totalorder %s519_s10, %s806_s0 }
   0x5   :  { %p525_p2 = pnand %p523_p1, %p520_p0 }
   0x7   :  { %528 = shalt.err (!%p525_p2)
}
   0x8   :  { %s529_s15 = scalar_lea.vmem %s19_s7, 2048  ;;  %p534_p4 = scmp.lt.s32.totalorder %s19_s7, %s19_s7 }
   0x9   :  { %p530_p3 = scmp.ne.s32.totalorder %s19_s7, %s529_s15  ;;  %p535_p5 = scmp.lt.s32.totalorder %s529_s15, %s529_s15 }
   0xb   :  { %p536_p6 = por %p535_p5, %p534_p4 }
   0xd   :  { %p537_p7 = pnand %p536_p6, %p530_p3 }
   0xf   :  { %540 = shalt.err (!%p537_p7)
}
  0x10   :  { %s568_s16 = smov 128   ;;  %s569_s17 = smov 8  }
  0x11   :  { %24 = dma.hbm_to_vmem [thread:$0]  %s806_s0, 2048, %s19_s7, [#allocation5], %s568_s16, %s568_s16, %s569_s17  }
  0x12   :  { %563 = dma.done.wait [#allocation5], 2048  }
  0x13   :  { %564 = vsyncadd [#allocation5], 4294965248  ;;  %vm34_vm0 = vcmask 130048   ;;  %vm36_vm1 = vcmask 129024   ;;  %v570_v0 = vmov 0.0   ;;  %v600_v1 = vld [vmem:[#allocation4] sm:$0xff] }
  0x14   :  { %35 = vst.msk [vmem:[#allocation2] sm:$0xff] %vm34_vm0, %v570_v0  ;;  %v602_v2 = vld [vmem:[#allocation4 + $0x8] sm:$0xff]  ;;  %vm45_vm2 = vcmask 1040384   ;;  %v604_v3 = vld [vmem:[#allocation4 + $0x10] sm:$0xff]  ;;  %s571_s20 = smov 1   ;;  %v46_v4 = vrot.slane %v600_v1, 7 }
  0x15   :  { %37 = vst.msk [vmem:[#allocation2 + $0x8] sm:$0x7f] %vm36_vm1, %v570_v0  ;;  %53 = vrot.lane.b32.xlu0 %v600_v1, %s571_s20  ;;  %v47_v5 = vrot.slane %v602_v2, 7  ;;  %108 = vrot.lane.b32.xlu1 %v604_v3, %s571_s20  ;;  %v101_v6 = vrot.slane %v604_v3, 7  ;;  %v613_v7 = vld [vmem:[#allocation4 + $0x18] sm:$0xff]  ;;  %v626_v17 = vld [vmem:[#allocation4 + $0x20] sm:$0xff] }
  0x16   :  { %v51_v8 = vsub.f32 %v600_v1, %v46_v4  ;;  %v102_v10 = vrot.slane %v613_v7, 7  ;;  %v628_v18 = vld [vmem:[#allocation4 + $0x28] sm:$0xff]  ;;  %vm67_vm3 = vcmask 1046528   ;;  %v152_v23 = vrot.slane %v626_v17, 7  ;;  %v637_v29 = vld [vmem:[#allocation4 + $0x30] sm:$0xff]  ;;  %v639_v30 = vld [vmem:[#allocation4 + $0x38] sm:$0xff] }
  0x17   :  { %v48_v9 = vsel %vm45_vm2, %v46_v4, %v47_v5  ;;  %v106_v15 = vsub.f32 %v604_v3, %v101_v6  ;;  %v153_v24 = vrot.slane %v628_v18, 7  ;;  %v648_v35 = vld [vmem:[#allocation4 + $0x40] sm:$0xff]  ;;  %v650_v36 = vld [vmem:[#allocation4 + $0x48] sm:$0xff]  ;;  %v654_v39 = vld [vmem:[#allocation4 + $0x70] sm:$0xff]  ;;  %v203_v48 = vrot.slane %v637_v29, 7  ;;  %s572_s0 = smov 127  }
  0x18   :  { %v52_v11 = vsub.f32 %v602_v2, %v48_v9  ;;  %v63_v12 = vmul.f32 %v51_v8, %v51_v8  ;;  %v103_v13 = vsel %vm45_vm2, %v101_v6, %v102_v10  ;;  %v157_v37 = vsub.f32 %v626_v17, %v152_v23  ;;  %v661_v41 = vld [vmem:[#allocation4 + $0x78] sm:$0xff]  ;;  %v664_v43 = vld [vmem:[#allocation4 + $0x50] sm:$0xff]  ;;  %v678_v57 = vld [vmem:[#allocation4 + $0x60] sm:$0xff]  ;;  %s573_s22 = smov [#allocation7]  }
  0x19   :  { %55 = vrot.lane.b32.xlu0 %v602_v2, %s571_s20  ;;  %110 = vrot.lane.b32.xlu1 %v613_v7, %s571_s20  ;;  %v107_v16 = vsub.f32 %v613_v7, %v103_v13  ;;  %v118_v27 = vmul.f32 %v106_v15, %v106_v15  ;;  %v154_v32 = vsel %vm45_vm2, %v152_v23, %v153_v24  ;;  %v407_v40 = vrot.slane %v654_v39, 7  ;;  %v666_v44 = vld [vmem:[#allocation4 + $0x58] sm:$0xff]  ;;  %v680_v58 = vld [vmem:[#allocation4 + $0x68] sm:$0xff]  ;;  %s499_s23 = sshll.u32 %s573_s22, 4  ;;  %s500_s23 = int_to_ptr.vmem [resolvable:$true] %s499_s23 }
  0x1a   :  { %v64_v14 = vmul.f32 %v52_v11, %v52_v11  ;;  %v68_v19 = vrot.slane %v63_v12, 1  ;;  %v158_v38 = vsub.f32 %v628_v18, %v154_v32  ;;  %v408_v45 = vrot.slane %v661_v41, 7  ;;  %s541_s25 = scalar_lea.vmem %s500_s23, 128  ;;  %p546_p9 = scmp.lt.s32.totalorder %s500_s23, %s500_s23 }
  0x1b   :  { %v61_v21 = vld [vmem:[#allocation2] sm:$0xff]  ;;  %v119_v28 = vmul.f32 %v107_v16, %v107_v16  ;;  %v122_v33 = vrot.slane %v118_v27, 1  ;;  %v169_v47 = vmul.f32 %v157_v37, %v157_v37  ;;  %v204_v49 = vrot.slane %v639_v30, 7  ;;  %p542_p8 = scmp.ne.s32.totalorder %s500_s23, %s541_s25  ;;  %p547_p10 = scmp.lt.s32.totalorder %s541_s25, %s541_s25 }
  0x1c   :  { %v62_v20 = vld [vmem:[#allocation2 + $0x8] sm:$0x7f]  ;;  %v69_v22 = vrot.slane %v64_v14, 1  ;;  %v412_v50 = vsub.f32 %v654_v39, %v407_v40  ;;  %v170_v53 = vmul.f32 %v158_v38, %v158_v38  ;;  %v409_v54 = vsel %vm45_vm2, %v407_v40, %v408_v45 }
  0x1d   :  { %159 = vrot.lane.b32.xlu0 %v626_v17, %s571_s20  ;;  %161 = vrot.lane.b32.xlu1 %v628_v18, %s571_s20  ;;  %v123_v34 = vrot.slane %v119_v28, 1  ;;  %v413_v59 = vsub.f32 %v661_v41, %v409_v54  ;;  %v173_v60 = vrot.slane %v169_v47, 1  ;;  %v205_v61 = vsel %vm45_vm2, %v203_v48, %v204_v49  ;;  %p548_p11 = por %p547_p10, %p546_p9 }
  0x1e   :  { %v70_v25 = vsel %vm67_vm3, %v68_v19, %v69_v22  ;;  %v74_v26 = vadd.f32 %v69_v22, %v62_v20  ;;  %v424_v56 = vmul.f32 %v412_v50, %v412_v50  ;;  %v174_v62 = vrot.slane %v170_v53, 1 }
  0x1f   :  { %v73_v31 = vadd.f32 %v70_v25, %v61_v21  ;;  %v124_v42 = vsel %vm67_vm3, %v122_v33, %v123_v34  ;;  %v685_v4 = vmul.f32 %v413_v59, %v413_v59  ;;  %vm38_vm4 = vcmask 121856   ;;  %p549_p12 = pnand %p548_p11, %p542_p8 }
  0x20   :  { %78 = vst.msk [vmem:[#allocation2 + $0x8] sm:$0x7f] %vm36_vm1, %v74_v26  ;;  %v428_v63 = vrot.slane %v424_v56, 1  ;;  %v208_v5 = vsub.f32 %v637_v29, %v203_v48  ;;  %v209_v6 = vsub.f32 %v639_v30, %v205_v61  ;;  %v175_v9 = vsel %vm67_vm3, %v173_v60, %v174_v62 }
  0x21   :  { %76 = vst.msk [vmem:[#allocation2] sm:$0xff] %vm34_vm0, %v73_v31  ;;  %210 = vrot.lane.b32.xlu0 %v637_v29, %s571_s20  ;;  %212 = vrot.lane.b32.xlu1 %v639_v30, %s571_s20  ;;  %v429_v8 = vrot.slane %v685_v4, 1  ;;  %v254_v12 = vrot.slane %v648_v35, 7  ;;  %v255_v13 = vrot.slane %v650_v36, 7  ;;  %v305_v27 = vrot.slane %v664_v43, 7 }
  0x22   :  { %39 = vst.msk [vmem:[#allocation3] sm:$0xff] %vm38_vm4, %v570_v0  ;;  %40 = vst.msk [vmem:[#allocation3 + $0x8] sm:$0xff] %vm38_vm4, %v570_v0  ;;  %v220_v15 = vmul.f32 %v208_v5, %v208_v5  ;;  %v221_v16 = vmul.f32 %v209_v6, %v209_v6  ;;  %v306_v28 = vrot.slane %v666_v44, 7  ;;  %v356_v49 = vrot.slane %v678_v57, 7 }
  0x23   :  { %v702_v10 = vsel %vm67_vm3, %v428_v63, %v429_v8  ;;  %v256_v20 = vsel %vm45_vm2, %v254_v12, %v255_v13  ;;  %v259_v23 = vsub.f32 %v648_v35, %v254_v12  ;;  %v310_v45 = vsub.f32 %v664_v43, %v305_v27 }
  0x24   :  { %v224_v21 = vrot.slane %v220_v15, 1  ;;  %v225_v22 = vrot.slane %v221_v16, 1  ;;  %v260_v24 = vsub.f32 %v650_v36, %v256_v20  ;;  %v307_v38 = vsel %vm45_vm2, %v305_v27, %v306_v28 }
  0x25   :  { %261 = vrot.lane.b32.xlu0 %v648_v35, %s571_s20  ;;  %263 = vrot.lane.b32.xlu1 %v650_v36, %s571_s20  ;;  %v271_v33 = vmul.f32 %v259_v23, %v259_v23  ;;  %v357_v50 = vrot.slane %v680_v58, 7  ;;  %v322_v53 = vmul.f32 %v310_v45, %v310_v45  ;;  %v361_v61 = vsub.f32 %v678_v57, %v356_v49 }
  0x26   :  { %v226_v25 = vsel %vm67_vm3, %v224_v21, %v225_v22 }
  0x27   :  { %v117_v46 = vld [vmem:[#allocation2 + $0x8] sm:$0x7f]  ;;  %v275_v40 = vrot.slane %v271_v33, 1  ;;  %v358_v56 = vsel %vm45_vm2, %v356_v49, %v357_v50  ;;  %v326_v59 = vrot.slane %v322_v53, 1 }
  0x28   :  { %v116_v51 = vld [vmem:[#allocation2] sm:$0xff]  ;;  %v128_v52 = vadd.f32 %v123_v34, %v117_v46  ;;  %v272_v34 = vmul.f32 %v260_v24, %v260_v24  ;;  %v311_v46 = vsub.f32 %v666_v44, %v307_v38 }
  0x29   :  { %v127_v55 = vadd.f32 %v124_v42, %v116_v51  ;;  %312 = vrot.lane.b32.xlu0 %v664_v43, %s571_s20  ;;  %314 = vrot.lane.b32.xlu1 %v666_v44, %s571_s20 }
  0x2a   :  { %130 = vst.msk [vmem:[#allocation2 + $0x8] sm:$0x7f] %vm36_vm1, %v128_v52  ;;  %v276_v42 = vrot.slane %v272_v34, 1  ;;  %v323_v54 = vmul.f32 %v311_v46, %v311_v46 }
  0x2b   :  { %129 = vst.msk [vmem:[#allocation2] sm:$0xff] %vm34_vm0, %v127_v55 }
  0x2c   :  { %v277_v47 = vsel %vm67_vm3, %v275_v40, %v276_v42  ;;  %v327_v60 = vrot.slane %v323_v54, 1 }
  0x2d   :  { %363 = vrot.lane.b32.xlu0 %v678_v57, %s571_s20  ;;  %365 = vrot.lane.b32.xlu1 %v680_v58, %s571_s20 }
  0x2e   :  { %v328_v63 = vsel %vm67_vm3, %v326_v59, %v327_v60 }
  0x31   :  { %v168_v11 = vld [vmem:[#allocation2 + $0x8] sm:$0x7f] }
  0x32   :  { %v167_v14 = vld [vmem:[#allocation2] sm:$0xff]  ;;  %v179_v0 = vadd.f32 %v174_v62, %v168_v11  ;;  %v362_v62 = vsub.f32 %v680_v58, %v358_v56  ;;  %v373_v11 = vmul.f32 %v361_v61, %v361_v61 }
  0x33   :  { %v178_v19 = vadd.f32 %v175_v9, %v167_v14 }
  0x34   :  { %181 = vst.msk [vmem:[#allocation2 + $0x8] sm:$0x7f] %vm36_vm1, %v179_v0  ;;  %v374_v12 = vmul.f32 %v362_v62, %v362_v62  ;;  %v377_v14 = vrot.slane %v373_v11, 1 }
  0x35   :  { %180 = vst.msk [vmem:[#allocation2] sm:$0xff] %vm34_vm0, %v178_v19 }
  0x36   :  { %v378_v0 = vrot.slane %v374_v12, 1 }
  0x38   :  { %v379_v15 = vsel %vm67_vm3, %v377_v14, %v378_v0 }
  0x3b   :  { %v219_v26 = vld [vmem:[#allocation2 + $0x8] sm:$0x7f] }
  0x3c   :  { %v218_v31 = vld [vmem:[#allocation2] sm:$0xff]  ;;  %v230_v32 = vadd.f32 %v225_v22, %v219_v26 }
  0x3d   :  { %v229_v37 = vadd.f32 %v226_v25, %v218_v31 }
  0x3e   :  { %232 = vst.msk [vmem:[#allocation2 + $0x8] sm:$0x7f] %vm36_vm1, %v230_v32 }
  0x3f   :  { %231 = vst.msk [vmem:[#allocation2] sm:$0xff] %vm34_vm0, %v229_v37 }
  0x45   :  { %v270_v48 = vld [vmem:[#allocation2 + $0x8] sm:$0x7f] }
  0x46   :  { %v269_v51 = vld [vmem:[#allocation2] sm:$0xff]  ;;  %v281_v52 = vadd.f32 %v276_v42, %v270_v48 }
  0x47   :  { %v280_v55 = vadd.f32 %v277_v47, %v269_v51 }
  0x48   :  { %283 = vst.msk [vmem:[#allocation2 + $0x8] sm:$0x7f] %vm36_vm1, %v281_v52 }
  0x49   :  { %282 = vst.msk [vmem:[#allocation2] sm:$0xff] %vm34_vm0, %v280_v55 }
  0x4f   :  { %v321_v5 = vld [vmem:[#allocation2 + $0x8] sm:$0x7f] }
  0x50   :  { %v320_v6 = vld [vmem:[#allocation2] sm:$0xff]  ;;  %v332_v9 = vadd.f32 %v327_v60, %v321_v5  ;;  %v79_v5 = vld [vmem:[#allocation3] sm:$0xff] }
  0x51   :  { %v331_v13 = vadd.f32 %v328_v63, %v320_v6 }
  0x52   :  { %334 = vst.msk [vmem:[#allocation2 + $0x8] sm:$0x7f] %vm36_vm1, %v332_v9 }
  0x53   :  { %333 = vst.msk [vmem:[#allocation2] sm:$0xff] %vm34_vm0, %v331_v13 }
  0x59   :  { %v372_v16 = vld [vmem:[#allocation2 + $0x8] sm:$0x7f] }
  0x5a   :  { %v371_v19 = vld [vmem:[#allocation2] sm:$0xff]  ;;  %v383_v20 = vadd.f32 %v378_v0, %v372_v16 }
  0x5b   :  { %v382_v21 = vadd.f32 %v379_v15, %v371_v19 }
  0x5c   :  { %385 = vst.msk [vmem:[#allocation2 + $0x8] sm:$0x7f] %vm36_vm1, %v383_v20 }
  0x5d   :  { %384 = vst.msk [vmem:[#allocation2] sm:$0xff] %vm34_vm0, %v382_v21 }
  0x63   :  { %v423_v22 = vld [vmem:[#allocation2 + $0x8] sm:$0x7f] }
  0x64   :  { %v422_v23 = vld [vmem:[#allocation2] sm:$0xff]  ;;  %v434_v24 = vadd.f32 %v429_v8, %v423_v22 }
  0x65   :  { %v433_v25 = vadd.f32 %v702_v10, %v422_v23 }
  0x66   :  { %436 = vst.msk [vmem:[#allocation2 + $0x8] sm:$0x7f] %vm36_vm1, %v434_v24 }
  0x67   :  { %435 = vst.msk [vmem:[#allocation2] sm:$0xff] %vm34_vm0, %v433_v25 }
  0x87   :  { %v54_v26 = vpop.permute.xlu0 %53  ;;  %v109_v27 = vpop.permute.xlu1 %108 }
  0x88   :  { %v59_v28 = vsub.f32 %v600_v1, %v54_v26  ;;  %v114_v4 = vsub.f32 %v604_v3, %v109_v27 }
  0x8a   :  { %v81_v31 = vmul.f32 %v59_v28, %v59_v28  ;;  %v133_v37 = vmul.f32 %v114_v4, %v114_v4 }
  0x8b   :  { %v56_v32 = vpop.permute.xlu0 %55  ;;  %v111_v8 = vpop.permute.xlu1 %110 }
  0x8c   :  { %v60_v33 = vsub.f32 %v602_v2, %v56_v32  ;;  %85 = vrot.lane.b32.xlu0 %v81_v31, %s572_s0  ;;  %v115_v1 = vsub.f32 %v613_v7, %v111_v8  ;;  %v456_v32 = vld [vmem:[#allocation2] sm:$0xff] }
  0x8e   :  { %v82_v34 = vmul.f32 %v60_v33, %v60_v33  ;;  %v134_v3 = vmul.f32 %v115_v1, %v115_v1  ;;  %v457_v33 = vld [vmem:[#allocation2 + $0x8] sm:$0x7f] }
  0x8f   :  { %v160_v10 = vpop.permute.xlu0 %159  ;;  %v162_v40 = vpop.permute.xlu1 %161 }
  0x90   :  { %414 = vrot.lane.b32.xlu0 %v654_v39, %s571_s20  ;;  %87 = vrot.lane.b32.xlu1 %v82_v34, %s572_s0  ;;  %v165_v38 = vsub.f32 %v626_v17, %v160_v10  ;;  %v166_v2 = vsub.f32 %v628_v18, %v162_v40  ;;  %v458_v34 = vsel %vm34_vm0, %v456_v32, 0.0  ;;  %v459_v10 = vsel %vm36_vm1, %v457_v33, 0.0 }
  0x92   :  { %v184_v45 = vmul.f32 %v165_v38, %v165_v38  ;;  %v185_v48 = vmul.f32 %v166_v2, %v166_v2  ;;  %v460_v38 = vadd.f32 %v459_v10, %v458_v34 }
  0x93   :  { %v211_v42 = vpop.permute.xlu0 %210  ;;  %v213_v47 = vpop.permute.xlu1 %212 }
  0x94   :  { %416 = vrot.lane.b32.xlu1 %v661_v41, %s571_s20  ;;  %137 = vrot.lane.b32.xlu0 %v133_v37, %s572_s0  ;;  %v216_v46 = vsub.f32 %v637_v29, %v211_v42  ;;  %v217_v17 = vsub.f32 %v639_v30, %v213_v47 }
  0x96   :  { %v235_v7 = vmul.f32 %v216_v46, %v216_v46  ;;  %v236_v53 = vmul.f32 %v217_v17, %v217_v17 }
  0x97   :  { %v262_v49 = vpop.permute.xlu0 %261  ;;  %v264_v50 = vpop.permute.xlu1 %263 }
  0x98   :  { %139 = vrot.lane.b32.xlu1 %v134_v3, %s572_s0  ;;  %188 = vrot.lane.b32.xlu0 %v184_v45, %s572_s0  ;;  %v267_v18 = vsub.f32 %v648_v35, %v262_v49  ;;  %v268_v51 = vsub.f32 %v650_v36, %v264_v50 }
  0x9a   :  { %v286_v29 = vmul.f32 %v267_v18, %v267_v18  ;;  %v287_v56 = vmul.f32 %v268_v51, %v268_v51 }
  0x9b   :  { %v313_v52 = vpop.permute.xlu0 %312  ;;  %v315_v55 = vpop.permute.xlu1 %314 }
  0x9c   :  { %190 = vrot.lane.b32.xlu1 %v185_v48, %s572_s0  ;;  %239 = vrot.lane.b32.xlu0 %v235_v7, %s572_s0  ;;  %v318_v54 = vsub.f32 %v664_v43, %v313_v52  ;;  %v319_v35 = vsub.f32 %v666_v44, %v315_v55 }
  0x9e   :  { %v337_v30 = vmul.f32 %v318_v54, %v318_v54  ;;  %v338_v61 = vmul.f32 %v319_v35, %v319_v35 }
  0x9f   :  { %v364_v59 = vpop.permute.xlu0 %363  ;;  %v366_v60 = vpop.permute.xlu1 %365 }
  0xa0   :  { %241 = vrot.lane.b32.xlu1 %v236_v53, %s572_s0  ;;  %290 = vrot.lane.b32.xlu0 %v286_v29, %s572_s0  ;;  %v369_v36 = vsub.f32 %v678_v57, %v364_v59  ;;  %v370_v43 = vsub.f32 %v680_v58, %v366_v60  ;;  %v80_v57 = vld [vmem:[#allocation3 + $0x8] sm:$0xff] }
  0xa2   :  { %v388_v62 = vmul.f32 %v369_v36, %v369_v36  ;;  %v389_v63 = vmul.f32 %v370_v43, %v370_v43 }
  0xa4   :  { %292 = vrot.lane.b32.xlu1 %v287_v56, %s572_s0  ;;  %341 = vrot.lane.b32.xlu0 %v337_v30, %s572_s0 }
  0xa8   :  { %343 = vrot.lane.b32.xlu1 %v338_v61, %s572_s0  ;;  %392 = vrot.lane.b32.xlu0 %v388_v62, %s572_s0 }
  0xac   :  { %394 = vrot.lane.b32.xlu1 %v389_v63, %s572_s0 }
  0xfe   :  { %v86_v44 = vpop.permute.xlu0 %85 }
  0xff   :  { %v91_v6 = vadd.f32 %v86_v44, %v79_v5 }
 0x101   :  { %94 = vst.msk [vmem:[#allocation3] sm:$0xff] %vm38_vm4, %v91_v6 }
 0x102   :  { %v88_v9 = vpop.permute.xlu1 %87  ;;  %v415_v11 = vpop.permute.xlu0 %414 }
 0x103   :  { %v92_v12 = vadd.f32 %v88_v9, %v80_v57  ;;  %v420_v13 = vsub.f32 %v654_v39, %v415_v11 }
 0x105   :  { %95 = vst.msk [vmem:[#allocation3 + $0x8] sm:$0xff] %vm38_vm4, %v92_v12  ;;  %v439_v58 = vmul.f32 %v420_v13, %v420_v13 }
 0x106   :  { %v417_v14 = vpop.permute.xlu1 %416  ;;  %v138_v0 = vpop.permute.xlu0 %137 }
 0x107   :  { %v421_v15 = vsub.f32 %v661_v41, %v417_v14  ;;  %443 = vrot.lane.b32.xlu0 %v439_v58, %s572_s0 }
 0x108   :  { %v131_v16 = vld [vmem:[#allocation3] sm:$0xff] }
 0x109   :  { %v440_v19 = vmul.f32 %v421_v15, %v421_v15  ;;  %v143_v20 = vadd.f32 %v138_v0, %v131_v16 }
 0x10a   :  { %v140_v21 = vpop.permute.xlu1 %139  ;;  %v189_v39 = vpop.permute.xlu0 %188 }
 0x10b   :  { %145 = vst.msk [vmem:[#allocation3] sm:$0xff] %vm38_vm4, %v143_v20  ;;  %445 = vrot.lane.b32.xlu1 %v440_v19, %s572_s0  ;;  %v484_v20 = vlaneseq }
 0x10c   :  { %v132_v22 = vld [vmem:[#allocation3 + $0x8] sm:$0xff] }
 0x10d   :  { %v144_v23 = vadd.f32 %v140_v21, %v132_v22  ;;  %v485_v21 = vand.u32 127, %v484_v20 }
 0x10e   :  { %v191_v26 = vpop.permute.xlu1 %190  ;;  %v240_v28 = vpop.permute.xlu0 %239 }
 0x10f   :  { %146 = vst.msk [vmem:[#allocation3 + $0x8] sm:$0xff] %vm38_vm4, %v144_v23  ;;  %vm487_vm5 = vcmp.eq.s32.totalorder %v485_v21, 1  ;;  %vm486_vm6 = vcmp.eq.s32.totalorder %v485_v21, 0 }
 0x112   :  { %v182_v24 = vld [vmem:[#allocation3] sm:$0xff]  ;;  %v242_v8 = vpop.permute.xlu1 %241  ;;  %v291_v40 = vpop.permute.xlu0 %290 }
 0x113   :  { %v194_v25 = vadd.f32 %v189_v39, %v182_v24 }
 0x115   :  { %196 = vst.msk [vmem:[#allocation3] sm:$0xff] %vm38_vm4, %v194_v25 }
 0x116   :  { %v183_v41 = vld [vmem:[#allocation3 + $0x8] sm:$0xff]  ;;  %v293_v3 = vpop.permute.xlu1 %292  ;;  %v342_v47 = vpop.permute.xlu0 %341 }
 0x117   :  { %v195_v27 = vadd.f32 %v191_v26, %v183_v41 }
 0x119   :  { %197 = vst.msk [vmem:[#allocation3 + $0x8] sm:$0xff] %vm38_vm4, %v195_v27 }
 0x11a   :  { %v344_v7 = vpop.permute.xlu1 %343  ;;  %v393_v50 = vpop.permute.xlu0 %392 }
 0x11c   :  { %v233_v31 = vld [vmem:[#allocation3] sm:$0xff] }
 0x11d   :  { %v245_v4 = vadd.f32 %v240_v28, %v233_v31 }
 0x11e   :  { %v395_v53 = vpop.permute.xlu1 %394 }
 0x11f   :  { %247 = vst.msk [vmem:[#allocation3] sm:$0xff] %vm38_vm4, %v245_v4 }
 0x120   :  { %v234_v37 = vld [vmem:[#allocation3 + $0x8] sm:$0xff] }
 0x121   :  { %v246_v1 = vadd.f32 %v242_v8, %v234_v37 }
 0x123   :  { %248 = vst.msk [vmem:[#allocation3 + $0x8] sm:$0xff] %vm38_vm4, %v246_v1 }
 0x126   :  { %v284_v2 = vld [vmem:[#allocation3] sm:$0xff]  ;;  %461 = vadd.xlane.f32.xlu0 %v460_v38 }
 0x127   :  { %v296_v42 = vadd.f32 %v291_v40, %v284_v2 }
 0x129   :  { %298 = vst.msk [vmem:[#allocation3] sm:$0xff] %vm38_vm4, %v296_v42 }
 0x12a   :  { %v285_v45 = vld [vmem:[#allocation3 + $0x8] sm:$0xff] }
 0x12b   :  { %v297_v46 = vadd.f32 %v293_v3, %v285_v45 }
 0x12d   :  { %299 = vst.msk [vmem:[#allocation3 + $0x8] sm:$0xff] %vm38_vm4, %v297_v46 }
 0x130   :  { %v335_v48 = vld [vmem:[#allocation3] sm:$0xff] }
 0x131   :  { %v347_v49 = vadd.f32 %v342_v47, %v335_v48 }
 0x133   :  { %349 = vst.msk [vmem:[#allocation3] sm:$0xff] %vm38_vm4, %v347_v49 }
 0x134   :  { %v336_v17 = vld [vmem:[#allocation3 + $0x8] sm:$0xff] }
 0x135   :  { %v348_v18 = vadd.f32 %v344_v7, %v336_v17 }
 0x137   :  { %350 = vst.msk [vmem:[#allocation3 + $0x8] sm:$0xff] %vm38_vm4, %v348_v18 }
 0x13a   :  { %v386_v51 = vld [vmem:[#allocation3] sm:$0xff] }
 0x13b   :  { %v398_v52 = vadd.f32 %v393_v50, %v386_v51 }
 0x13d   :  { %400 = vst.msk [vmem:[#allocation3] sm:$0xff] %vm38_vm4, %v398_v52 }
 0x13e   :  { %v387_v29 = vld [vmem:[#allocation3 + $0x8] sm:$0xff] }
 0x13f   :  { %v399_v54 = vadd.f32 %v395_v53, %v387_v29 }
 0x141   :  { %401 = vst.msk [vmem:[#allocation3 + $0x8] sm:$0xff] %vm38_vm4, %v399_v54 }
 0x144   :  { %v437_v56 = vld [vmem:[#allocation3] sm:$0xff] }
 0x148   :  { %v438_v35 = vld [vmem:[#allocation3 + $0x8] sm:$0xff] }
 0x179   :  { %v444_v55 = vpop.permute.xlu0 %443 }
 0x17a   :  { %v449_v59 = vadd.f32 %v444_v55, %v437_v56 }
 0x17c   :  { %451 = vst.msk [vmem:[#allocation3] sm:$0xff] %vm38_vm4, %v449_v59 }
 0x17d   :  { %v446_v30 = vpop.permute.xlu1 %445 }
 0x17e   :  { %v450_v36 = vadd.f32 %v446_v30, %v438_v35 }
 0x180   :  { %452 = vst.msk [vmem:[#allocation3 + $0x8] sm:$0xff] %vm38_vm4, %v450_v36 }
 0x183   :  { %v470_v60 = vld [vmem:[#allocation3] sm:$0xff] }
 0x184   :  { %v472_v62 = vsel %vm38_vm4, %v470_v60, 0.0 }
 0x187   :  { %v471_v61 = vld [vmem:[#allocation3 + $0x8] sm:$0xff] }
 0x188   :  { %v473_v43 = vsel %vm38_vm4, %v471_v61, 0.0 }
 0x189   :  { %v474_v63 = vadd.f32 %v473_v43, %v472_v62 }
 0x18b   :  { %475 = vadd.xlane.f32.xlu1 %v474_v63 }
 0x1b3   :  { %v462_v5 = vpop.xlane.xlu0 %461 }
 0x1b4   :  { %v463_v44 = vrot.slane %v462_v5, 4 }
 0x1b6   :  { %v464_v6 = vadd.f32 %v463_v44, %v462_v5 }
 0x1b8   :  { %v465_v57 = vrot.slane %v464_v6, 2 }
 0x1ba   :  { %v466_v9 = vadd.f32 %v465_v57, %v464_v6 }
 0x1bc   :  { %v467_v11 = vrot.slane %v466_v9, 1 }
 0x1be   :  { %v468_v12 = vadd.f32 %v467_v11, %v466_v9 }
 0x1c0   :  { %508 = vpush %v468_v12 }
 0x1f1   :  { %s509_s21 = spop %508 }
 0x1f2   :  { %v490_v23 = vstv %s509_s21 }
 0x218   :  { %v476_v13 = vpop.xlane.xlu1 %475 }
 0x219   :  { %v477_v58 = vrot.slane %v476_v13, 4 }
 0x21b   :  { %v478_v14 = vadd.f32 %v477_v58, %v476_v13 }
 0x21d   :  { %v479_v0 = vrot.slane %v478_v14, 2 }
 0x21f   :  { %v480_v15 = vadd.f32 %v479_v0, %v478_v14 }
 0x221   :  { %v481_v16 = vrot.slane %v480_v15, 1 }
 0x223   :  { %v482_v19 = vadd.f32 %v481_v16, %v480_v15 }
 0x225   :  { %510 = vpush %v482_v19 }
 0x256   :  { %s511_s24 = spop %510 }
 0x257   :  { %v488_v22 = vstv %s511_s24 }
 0x258   :  { %v489_v39 = vsel %vm487_vm5, %v488_v22, 0.0 }
 0x259   :  { %v491_v24 = vsel %vm486_vm6, %v490_v23, %v489_v39 }
 0x25a   :  { %492 = vst [vmem:[#allocation7] sm:$0xff] %v491_v24 }
 0x25b   :  { %552 = shalt.err (!%p549_p12)
}
 0x25c   :  { %s553_s28 = scalar_lea.hbm %s807_s1, 128 }
 0x25d   :  { %p554_p13 = scmp.ne.s32.totalorder %s807_s1, %s553_s28  ;;  %p557_p0 = scmp.lt.u32.totalorder %s553_s28, %s807_s1 }
 0x25f   :  { %p559_p1 = pnand %p557_p0, %p554_p13 }
 0x261   :  { %562 = shalt.err (!%p559_p1)
}
 0x262   :  { %502 = dma.vmem_to_hbm [thread:$0]  %s500_s23, 128, %s807_s1, [#allocation6]  }
 0x263   :  { %565 = dma.done.wait [#allocation6], 128  }
 0x264   :  { %566 = vsyncadd [#allocation6], 4294967168 }
 0x265   :  { %506 = vsyncpa [#allocation5], 1 }
 0x266   :  { %507 = vsyncpa [#allocation6], 1 }

</bundles_post_ra>
